<compile_context>
chip_gen: v7x
topology: tpu7x:2x2x1
jax: 0.10.0
libtpu: 0.0.40
codegen_flags: <defaults>
</compile_context>

<pallas_src>
import jax
import jax.numpy as jnp
import numpy as np
from jax.experimental import pallas as pl
from jax.experimental.pallas import tpu as pltpu

GROUPS = 8


def spatial_weighting_kernel(x_ref, w2s_ref, wk_ref, bias_ref, o_ref):
    # x_ref:    (Bt, L, C)  slab of Bt batches
    # w2s_ref:  (3, L)      shifted gate weights, one row per conv tap
    # wk_ref:   (3, C, C)   dense block-diagonal per-tap conv weights (c_in -> c_out)
    # bias_ref: (1, C)      sum(w2) * conv_b + gate_b
    bt, L, C = x_ref.shape
    x = x_ref[...]                                              # (Bt, L, C) f32

    # r[b, k, c] = sum_l w2s[k, l] * x[b, l, c]  — the only statistic the gate needs.
    w2s = jnp.broadcast_to(w2s_ref[...][None], (bt, 3, L))      # (Bt, 3, L)
    r = jnp.einsum('bkl,blc->bkc', w2s, x,
                   preferred_element_type=jnp.float32)          # (Bt, 3, C)

    gate_lin = (jnp.dot(r[:, 0, :], wk_ref[0], preferred_element_type=jnp.float32)
                + jnp.dot(r[:, 1, :], wk_ref[1], preferred_element_type=jnp.float32)
                + jnp.dot(r[:, 2, :], wk_ref[2], preferred_element_type=jnp.float32)
                + bias_ref[...])                                # (Bt, C)
    gate = jax.nn.sigmoid(gate_lin)                             # (Bt, C)

    # Re-read x from VMEM for the epilogue (keeps vreg pressure low across matmuls).
    o_ref[...] = (x_ref[...] * gate[:, None, :]).astype(o_ref.dtype)


def _pick_block_b(batch):
    """Largest divisor of `batch` (<=64) that still leaves >= 2 grid steps."""
    best = 1
    for d in range(1, batch + 1):
        if batch % d == 0 and d <= 64 and batch // d >= 2:
            best = d
    return best


def spatial_weighting(x, conv_w, conv_b, gate_w, gate_b, *, block_b=None):
    """x: (B, L, C); conv_w: (C, C//8, 3); conv_b: (C,); gate_w: (1, C, 1); gate_b: (1,)."""
    B, L, C = x.shape
    assert L == C, "module's gate conv requires seq_len == dim (see PyTorch forward)"
    assert C % GROUPS == 0
    gc = C // GROUPS

    if block_b is None:
        block_b = _pick_block_b(B)
    assert B % block_b == 0

    # ---- parameter-only glue (plain JAX, outside the kernel) -------------------
    # Dense block-diagonal per-tap weights wk[k, c_in, c_out].
    w1 = conv_w.reshape(GROUPS, gc, gc, 3)        # [group, out_local, in_local, k]
    wk = jnp.stack(
        [jax.scipy.linalg.block_diag(*[w1[g, :, :, k].T for g in range(GROUPS)])
         for k in range(3)],
        axis=0,
    )                                             # (3, C, C)

    # Gate fusion: gate_lin = sum_k (shift_k(w2) @ x) @ wk[k] + sum(w2)*b1 + b2.
    w2 = gate_w[0, :, 0]                          # (L,)  (== (C,))
    zero = jnp.zeros((1,), w2.dtype)
    w2s = jnp.stack([jnp.concatenate([w2[1:], zero]),     # tap k=0 reads x[l-1]
                     w2,                                   # tap k=1 reads x[l]
                     jnp.concatenate([zero, w2[:-1]])],    # tap k=2 reads x[l+1]
                    axis=0)                       # (3, L)
    bias = (jnp.sum(w2) * conv_b + gate_b[0]).reshape(1, C)

    grid = (B // block_b,)
    return pl.pallas_call(
        spatial_weighting_kernel,
        out_shape=jax.ShapeDtypeStruct((B, L, C), x.dtype),
        grid_spec=pltpu.PrefetchScalarGridSpec(
            num_scalar_prefetch=0,
            grid=grid,
            in_specs=[
                pl.BlockSpec((block_b, L, C), lambda b: (b, 0, 0)),
                pl.BlockSpec((3, L), lambda b: (0, 0)),
                pl.BlockSpec((3, C, C), lambda b: (0, 0, 0)),
                pl.BlockSpec((1, C), lambda b: (0, 0)),
            ],
            out_specs=pl.BlockSpec((block_b, L, C), lambda b: (b, 0, 0)),
        ),
        compiler_params=pltpu.CompilerParams(dimension_semantics=("parallel",)),
    )(x, w2s, wk, bias)


def ref_forward(x, conv_w, conv_b, gate_w, gate_b):
    """Pure-JAX reference mirroring the PyTorch forward exactly."""
    xt = jnp.transpose(x, (0, 2, 1))              # (B, C, L)
    sf = jax.lax.conv_general_dilated(
        xt, conv_w, window_strides=(1,), padding=((1, 1),),
        dimension_numbers=('NCH', 'OIH', 'NCH'),
        feature_group_count=GROUPS,
        precision=jax.lax.Precision.HIGHEST) + conv_b[None, :, None]
    sf = jnp.transpose(sf, (0, 2, 1))             # (B, L, C)
    g = jax.nn.sigmoid(jnp.einsum('blc,l->bc', sf, gate_w[0, :, 0],
                                  precision=jax.lax.Precision.HIGHEST) + gate_b[0])
    return x * g[:, None, :]


if __name__ == "__main__":
    B, L, dim = 16, 32, 32                        # gate conv requires L == dim; dim % 8 == 0
    gc = dim // GROUPS

    key = jax.random.PRNGKey(0)
    kx, kw1, kb1, kw2, kb2 = jax.random.split(key, 5)

    x = jax.random.normal(kx, (B, L, dim), jnp.float32)

    # Deterministic param init (PyTorch-default-style uniform bounds).
    k1 = 1.0 / np.sqrt(gc * 3)
    conv_w = jax.random.uniform(kw1, (dim, gc, 3), jnp.float32, -k1, k1)
    conv_b = jax.random.uniform(kb1, (dim,), jnp.float32, -k1, k1)
    k2 = 1.0 / np.sqrt(dim)
    gate_w = jax.random.uniform(kw2, (1, dim, 1), jnp.float32, -k2, k2)
    gate_b = jax.random.uniform(kb2, (1,), jnp.float32, -k2, k2)

    out = jax.block_until_ready(spatial_weighting(x, conv_w, conv_b, gate_w, gate_b))
    ref = ref_forward(x, conv_w, conv_b, gate_w, gate_b)
    np.testing.assert_allclose(np.asarray(out), np.asarray(ref), rtol=2e-5, atol=2e-5)
    print("KERNEL_OK")
</pallas_src>

<mosaic_0001>
module attributes {stable_mosaic.version = 11 : i64} {
  func.func @spatial_weighting_kernel(%arg0: i32, %arg1: memref<8x32x32xf32, #tpu.memory_space<vmem>>, %arg2: memref<3x32xf32, #tpu.memory_space<vmem>>, %arg3: memref<3x32x32xf32, #tpu.memory_space<vmem>>, %arg4: memref<1x32xf32, #tpu.memory_space<vmem>>, %arg5: memref<8x32x32xf32, #tpu.memory_space<vmem>>) attributes {dimension_semantics = [#tpu.dimension_semantics<parallel>], iteration_bounds = array<i64: 2>, scalar_prefetch = 0 : i64, scratch_operands = 0 : i64, tpu.core_type = #tpu.core_type<tc>, window_params = [{transform_indices = @transform_0, window_bounds = array<i64: 8, 32, 32>}, {pipeline_mode = #tpu.pipeline_mode<synchronous>, transform_indices = @transform_1, window_bounds = array<i64: 3, 32>}, {pipeline_mode = #tpu.pipeline_mode<synchronous>, transform_indices = @transform_2, window_bounds = array<i64: 3, 32, 32>}, {pipeline_mode = #tpu.pipeline_mode<synchronous>, transform_indices = @transform_3, window_bounds = array<i64: 1, 32>}, {transform_indices = @transform_4, window_bounds = array<i64: 8, 32, 32>}]} {
    %c0 = arith.constant 0 : index
    %c0_0 = arith.constant 0 : index
    %c0_1 = arith.constant 0 : index
    %0 = vector.load %arg1[%c0, %c0_0, %c0_1] : memref<8x32x32xf32, #tpu.memory_space<vmem>>, vector<8x32x32xf32>
    %c0_2 = arith.constant 0 : index
    %c0_3 = arith.constant 0 : index
    %1 = vector.load %arg2[%c0_2, %c0_3] : memref<3x32xf32, #tpu.memory_space<vmem>>, vector<3x32xf32>
    %2 = vector.shape_cast %1 : vector<3x32xf32> to vector<1x3x32xf32>
    %3 = vector.shape_cast %2 : vector<1x3x32xf32> to vector<1x3x32xf32>
    %4 = vector.broadcast %3 : vector<1x3x32xf32> to vector<8x3x32xf32>
    "tpu.trace_start"() <{level = 10 : i32, message = "bkl,blc->bkc"}> : () -> ()
    %cst = arith.constant dense<0.000000e+00> : vector<8x3x32xf32>
    %5 = tpu.matmul %4, %0, %cst {dimension_numbers = #tpu.dot_dimension_numbers<[2], [1], [1], [2], [0, 0, 0, 1, 1, 2], [0], [0]>} : vector<8x3x32xf32>, vector<8x32x32xf32>, vector<8x3x32xf32> -> vector<8x3x32xf32>
    "tpu.trace_stop"() : () -> ()
    %6 = vector.extract_strided_slice %5 {offsets = [0, 0, 0], sizes = [8, 1, 32], strides = [1, 1, 1]} : vector<8x3x32xf32> to vector<8x1x32xf32>
    %7 = vector.shape_cast %6 : vector<8x1x32xf32> to vector<8x32xf32>
    %c0_4 = arith.constant 0 : index
    %c0_5 = arith.constant 0 : index
    %c0_6 = arith.constant 0 : index
    %8 = vector.load %arg3[%c0_4, %c0_5, %c0_6] : memref<3x32x32xf32, #tpu.memory_space<vmem>>, vector<1x32x32xf32>
    %9 = vector.shape_cast %8 : vector<1x32x32xf32> to vector<32x32xf32>
    %cst_7 = arith.constant dense<0.000000e+00> : vector<8x32xf32>
    %10 = tpu.matmul %7, %9, %cst_7 {dimension_numbers = #tpu.dot_dimension_numbers<[1], [0], [0], [1], [0, 0, 1, 1], [], []>} : vector<8x32xf32>, vector<32x32xf32>, vector<8x32xf32> -> vector<8x32xf32>
    %11 = vector.extract_strided_slice %5 {offsets = [0, 1, 0], sizes = [8, 1, 32], strides = [1, 1, 1]} : vector<8x3x32xf32> to vector<8x1x32xf32>
    %12 = vector.shape_cast %11 : vector<8x1x32xf32> to vector<8x32xf32>
    %c1 = arith.constant 1 : index
    %c0_8 = arith.constant 0 : index
    %c0_9 = arith.constant 0 : index
    %13 = vector.load %arg3[%c1, %c0_8, %c0_9] : memref<3x32x32xf32, #tpu.memory_space<vmem>>, vector<1x32x32xf32>
    %14 = vector.shape_cast %13 : vector<1x32x32xf32> to vector<32x32xf32>
    %cst_10 = arith.constant dense<0.000000e+00> : vector<8x32xf32>
    %15 = tpu.matmul %12, %14, %cst_10 {dimension_numbers = #tpu.dot_dimension_numbers<[1], [0], [0], [1], [0, 0, 1, 1], [], []>} : vector<8x32xf32>, vector<32x32xf32>, vector<8x32xf32> -> vector<8x32xf32>
    %16 = arith.addf %10, %15 : vector<8x32xf32>
    %17 = vector.extract_strided_slice %5 {offsets = [0, 2, 0], sizes = [8, 1, 32], strides = [1, 1, 1]} : vector<8x3x32xf32> to vector<8x1x32xf32>
    %18 = vector.shape_cast %17 : vector<8x1x32xf32> to vector<8x32xf32>
    %c2 = arith.constant 2 : index
    %c0_11 = arith.constant 0 : index
    %c0_12 = arith.constant 0 : index
    %19 = vector.load %arg3[%c2, %c0_11, %c0_12] : memref<3x32x32xf32, #tpu.memory_space<vmem>>, vector<1x32x32xf32>
    %20 = vector.shape_cast %19 : vector<1x32x32xf32> to vector<32x32xf32>
    %cst_13 = arith.constant dense<0.000000e+00> : vector<8x32xf32>
    %21 = tpu.matmul %18, %20, %cst_13 {dimension_numbers = #tpu.dot_dimension_numbers<[1], [0], [0], [1], [0, 0, 1, 1], [], []>} : vector<8x32xf32>, vector<32x32xf32>, vector<8x32xf32> -> vector<8x32xf32>
    %22 = arith.addf %16, %21 : vector<8x32xf32>
    %c0_14 = arith.constant 0 : index
    %c0_15 = arith.constant 0 : index
    %23 = vector.load %arg4[%c0_14, %c0_15] : memref<1x32xf32, #tpu.memory_space<vmem>>, vector<1x32xf32>
    %24 = vector.broadcast %23 : vector<1x32xf32> to vector<8x32xf32>
    %25 = arith.addf %22, %24 : vector<8x32xf32>
    %26 = arith.negf %25 : vector<8x32xf32>
    %27 = math.exp %26 : vector<8x32xf32>
    %cst_16 = arith.constant 1.000000e+00 : f32
    %28 = vector.broadcast %cst_16 : f32 to vector<8x32xf32>
    %29 = arith.addf %28, %27 : vector<8x32xf32>
    %30 = arith.divf %28, %29 : vector<8x32xf32>
    %c0_17 = arith.constant 0 : index
    %c0_18 = arith.constant 0 : index
    %c0_19 = arith.constant 0 : index
    %31 = vector.load %arg1[%c0_17, %c0_18, %c0_19] : memref<8x32x32xf32, #tpu.memory_space<vmem>>, vector<8x32x32xf32>
    %32 = vector.shape_cast %30 : vector<8x32xf32> to vector<8x1x32xf32>
    %33 = vector.broadcast %32 : vector<8x1x32xf32> to vector<8x32x32xf32>
    %34 = arith.mulf %31, %33 : vector<8x32x32xf32>
    %c0_20 = arith.constant 0 : index
    %c0_21 = arith.constant 0 : index
    %c0_22 = arith.constant 0 : index
    %35 = vector.load %arg5[%c0_20, %c0_21, %c0_22] : memref<8x32x32xf32, #tpu.memory_space<vmem>>, vector<8x32x32xf32>
    tpu.vector_store %arg5[%c0_20, %c0_21, %c0_22], %34 {strides = array<i32>} : memref<8x32x32xf32, #tpu.memory_space<vmem>>, vector<8x32x32xf32>,
    return
  }
  func.func @transform_0(%arg0: i32) -> (i32, i32, i32) {
    %c0_i32 = arith.constant 0 : i32
    %c0_i32_0 = arith.constant 0 : i32
    %c0_i32_1 = arith.constant 0 : i32
    return %arg0, %c0_i32, %c0_i32_0 : i32, i32, i32
  }
  func.func @transform_1(%arg0: i32) -> (i32, i32) {
    %c0_i32 = arith.constant 0 : i32
    %c0_i32_0 = arith.constant 0 : i32
    %c0_i32_1 = arith.constant 0 : i32
    return %c0_i32, %c0_i32_0 : i32, i32
  }
  func.func @transform_2(%arg0: i32) -> (i32, i32, i32) {
    %c0_i32 = arith.constant 0 : i32
    %c0_i32_0 = arith.constant 0 : i32
    %c0_i32_1 = arith.constant 0 : i32
    %c0_i32_2 = arith.constant 0 : i32
    return %c0_i32, %c0_i32_0, %c0_i32_1 : i32, i32, i32
  }
  func.func @transform_3(%arg0: i32) -> (i32, i32) {
    %c0_i32 = arith.constant 0 : i32
    %c0_i32_0 = arith.constant 0 : i32
    %c0_i32_1 = arith.constant 0 : i32
    return %c0_i32, %c0_i32_0 : i32, i32
  }
  func.func @transform_4(%arg0: i32) -> (i32, i32, i32) {
    %c0_i32 = arith.constant 0 : i32
    %c0_i32_0 = arith.constant 0 : i32
    %c0_i32_1 = arith.constant 0 : i32
    return %arg0, %c0_i32, %c0_i32_0 : i32, i32, i32
  }
}

</mosaic_0001>

<bundles_post_ra>
// kernel: tpu_custom_call.1
= control target key start
LH: loop header
LB: loop body
LE: loop exit
PB: predicated region body
PF: predicated region fallthrough
CT: control target
= control target key end

     0   :  { %s2532_s0 = inlined_call_operand.hbm [shape: f32[16,32,32], index: 0, kind: input, shape index: {}]   ;;  %s2533_s1 = inlined_call_operand.hbm [shape: f32[3,32], index: 1, kind: input, shape index: {}]   ;;  %s2534_s2 = inlined_call_operand.hbm [shape: f32[3,32,32], index: 2, kind: input, shape index: {}]   ;;  %s2535_s3 = inlined_call_operand.vmem [shape: f32[1,32], index: 3, kind: input, shape index: {}]   ;;  %s2536_s4 = inlined_call_operand.hbm [shape: f32[16,32,32], index: 4, kind: output, shape index: {}]  }
   0x1   :  { %2542 = sst [smem:[#allocation12_spill]] %s2533_s1 }
   0x2   :  { %9 = vsyncpa [#allocation3], 0 }
   0x3   :  { %11 = vsyncpa [#allocation3 + $0x1], 0 }
   0x4   :  { %12 = vsyncpa [#allocation6], 0 }
   0x5   :  { %13 = vsyncpa [#allocation4], 0 }
   0x6   :  { %15 = vsyncpa [#allocation4 + $0x1], 0  ;;  %s1991_s15 = smov 0   ;;  %s1993_s16 = smov 0  }
   0x7   :  { %s1995_s17 = smov 0   ;;  %s1997_s18 = smov 0  }
   0x8 LB: > { %s2012_s19 = sadd.s32 4294967295, %s1952_s18   ;;  %s1438_s20 = sadd.s32 4294967294, %s1952_s18   ;;  %s1952_s18 = sphi %s1997_s18, %s2563_s18   ;;  %s1948_s17 = sphi %s1995_s17, %s2562_s17   ;;  %s1944_s16 = sphi %s1993_s16, %s2561_s16   ;;  %s1940_s15 = sphi %s1991_s15, %s2560_s15  }
   0x9   : > { %s2016_s21 = sadd.s32 1, %s1952_s18   ;;  %s28_s22 = sadd.s32 1, %s1948_s17 }
   0xa   : > { %s25_s23 = ssub.s32 %s1952_s18, %s2016_s21  ;;  %p35_p0 = scmp.ne.s32.totalorder %s1948_s17, %s1944_s16 }
   0xb   : > { %p26_p1 = scmp.eq.s32.totalorder %s25_s23, 0  ;;  %p36_p2 = scmp.eq.s32.totalorder %s1952_s18, 0 }
   0xc   : > { %p41_p3 = scmp.ne.s32.totalorder %s1944_s16, %s1940_s15  ;;  %p2537_p4 = scmp.eq.s32.totalorder %s2012_s19, 0 }
   0xd   : > { %s2028_s24 = scalar_select %p26_p1, %s1948_s17, %s28_s22  }
   0xe   : > { %p2030_p5 = por %p36_p2, %p35_p0  ;;  %p2036_p6 = por %p2537_p4, %p41_p3 }
   0xf   : > { %p128_p7 = scmp.eq.s32.totalorder %s2012_s19, 1  ;;  %p134_p8 = scmp.eq.s32.totalorder %s1438_s20, 1 }
  0x10   : > { %s2544_s26 = scalar_select %p2036_p6, 1, 0 }
  0x11   : > { %p1439_p9 = scmp.ge.s32.totalorder %s1952_s18, 1  ;;  %p141_p10 = scmp.lt.s32.totalorder %s1952_s18, 3 }
  0x12   : > { %p2043_p11 = por %p128_p7, %p35_p0  ;;  %p2047_p12 = por %p134_p8, %p41_p3 }
  0x13   : > { %p2051_p13 = pnand %p1439_p9, %p141_p10  ;;  %s1954_s30 = smov [#allocation5]  }
  0x14   : > { %s2545_s27 = scalar_select %p2043_p11, 1, 0 }
  0x15   : > { %s2546_s28 = scalar_select %p2047_p12, 1, 0 }
  0x16   : > { %s2547_s29 = scalar_select %p2051_p13, 1, 0 }
  0x17   : > { %p1729_p2 = pneg %p2051_p13  ;;  %s154_s5 = sshll.u32 %s1954_s30, 4  ;;  %s155_s5 = int_to_ptr.vmem [resolvable:$true] %s154_s5 }
  0x18   : > { %p1746_p4 = scmp.lt.s32.totalorder %s1952_s18, 2  ;;  %p2548_p0 = scmp.eq.s32.totalorder %s2012_s19, 0 }
  0x19   : > { %s1955_s8 = smov [#allocation7]   ;;  %s2551_s1 = sld [smem:[#allocation12_spill]] }
  0x1a   : > { %p2061_p7 = pnand %p1729_p2, %p2548_p0  ;;  %p2067_p3 = pnand %p1746_p4, %p2030_p5 }
  0x1b   : > { %s164_s9 = sshll.u32 %s1955_s8, 4  ;;  %s2071_s9 = int_to_ptr.vmem [resolvable:$true] %s164_s9 }
  0x1c   : > { %s2550_s7 = scalar_select %p2067_p3, 1, 0 }
  0x1d   : > { %p1798_p9 = pneg %p2061_p7 }
  0x1f   : > { %s1796_s12 = scalar_lea.hbm %s2551_s1, 64 }
  0x20   : > { %p1797_p8 = scmp.ne.s32.totalorder %s2551_s1, %s1796_s12  ;;  %p1803_p10 = scmp.lt.u32.totalorder %s1796_s12, %s2551_s1 }
  0x22   : > { %p1799_p4 = pnand %p1798_p9, %p1797_p8 }
  0x24   : > { %p1800_p5 = pneg %p1799_p4 }
  0x26   : > { %p1805_p2 = pnand %p1803_p10, %p1800_p5 }
  0x28   : > { %1808 = shalt.err (!%p1805_p2)
}
  0x29   : > { %s1809_s23 = scalar_lea.vmem %s155_s5, 64  ;;  %p1817_p11 = scmp.lt.s32.totalorder %s155_s5, %s155_s5 }
  0x2a   : > { %p1810_p0 = scmp.ne.s32.totalorder %s155_s5, %s1809_s23  ;;  %p1818_p6 = scmp.lt.s32.totalorder %s1809_s23, %s1809_s23 }
  0x2c   : > { %p1812_p1 = pnand %p1810_p0, %p1798_p9  ;;  %p1819_p13 = por %p1818_p6, %p1817_p11 }
  0x2e   : > { %p1813_p12 = pneg %p1812_p1 }
  0x30   : > { %p1820_p3 = pnand %p1819_p13, %p1813_p12 }
  0x32   : > { %1823 = shalt.err (!%p1820_p3)
}
  0x33   : > { %1732 = dma.hbm_to_vmem [thread:$0]  (!%p2061_p7), %s2551_s1, 64, %s155_s5, [#allocation6]  }
  0x34   : > { %s181_s8 = sand.u32 1, %s1948_s17   ;;  %s1824_s12 = scalar_lea.hbm %s2534_s2, 1536 }
  0x35   : > { %p1825_p1 = scmp.ne.s32.totalorder %s2534_s2, %s1824_s12  ;;  %p1831_p12 = scmp.lt.u32.totalorder %s1824_s12, %s2534_s2 }
  0x37   : > { %p1827_p6 = pnand %p1825_p1, %p1798_p9 }
  0x39   : > { %p1828_p11 = pneg %p1827_p6 }
  0x3b   : > { %p1833_p13 = pnand %p1831_p12, %p1828_p11 }
  0x3d   : > { %1836 = shalt.err (!%p1833_p13)
}
  0x3e   : > { %s1837_s5 = scalar_lea.vmem %s2071_s9, 1536  ;;  %p1845_p5 = scmp.lt.s32.totalorder %s2071_s9, %s2071_s9 }
  0x3f   : > { %p1838_p3 = scmp.ne.s32.totalorder %s2071_s9, %s1837_s5  ;;  %p1846_p10 = scmp.lt.s32.totalorder %s1837_s5, %s1837_s5 }
  0x41   : > { %p1840_p8 = pnand %p1838_p3, %p1798_p9  ;;  %p1847_p2 = por %p1846_p10, %p1845_p5 }
  0x43   : > { %p1841_p4 = pneg %p1840_p8 }
  0x45   : > { %p1848_p0 = pnand %p1847_p2, %p1841_p4 }
  0x47   : > { %1851 = shalt.err (!%p1848_p0)
}
  0x48   : > { %s1956_s23 = smov 128   ;;  %s1957_s25 = smov 8  }
  0x49   : > { %1735 = dma.hbm_to_vmem [thread:$0]  (!%p2061_p7), %s2534_s2, 1536, %s2071_s9, [#allocation6], %s1956_s23, %s1956_s23, %s1957_s25  }
  0x4a   : > { %s1443_s11 = sshll.u32 %s181_s8, 8  ;;  %s1472_s12 = sshll.u32 %s1952_s18, 12 }
  0x4b   : > { %s2128_s20 = scalar_lea.hbm %s2532_s0, %s1472_s12  ;;  %s185_s22 = scalar_lea.vmem [#allocation2], %s1443_s11 }
  0x4c   : > { %s193_s6 = sshll.u32 %s185_s22, 4  ;;  %s2132_s5 = scalar_lea.sflag [#allocation3], %s181_s8  ;;  %s2130_s6 = int_to_ptr.vmem [resolvable:$true] %s193_s6 }
  0x4d   : > { %s1852_s1 = scalar_lea.hbm %s2128_s20, 4096  ;;  %p2552_p7 = scmp.ne.s32.totalorder %s2550_s7, 0 }
  0x4e   : > { %p1853_p9 = scmp.ne.s32.totalorder %s2128_s20, %s1852_s1  ;;  %s1857_s10 = scalar_lea.hbm %s2532_s0, 8192 }
  0x4f   : > { %p1854_p1 = pneg %p2552_p7  ;;  %p1858_p12 = scmp.lt.u32.totalorder %s2128_s20, %s2532_s0 }
  0x50   : > { %p1859_p13 = scmp.lt.u32.totalorder %s1857_s10, %s1852_s1  ;;  %p1861_p8 = scmp.lt.u32.totalorder %s1852_s1, %s2128_s20 }
  0x51   : > { %p1855_p6 = pnand %p1854_p1, %p1853_p9 }
  0x52   : > { %p1860_p3 = por %p1859_p13, %p1858_p12 }
  0x53   : > { %p1856_p11 = pneg %p1855_p6 }
  0x54   : > { %p1862_p4 = por %p1861_p8, %p1860_p3 }
  0x56   : > { %p1863_p5 = pnand %p1862_p4, %p1856_p11 }
  0x58   : > { %1866 = shalt.err (!%p1863_p5)
}
  0x59   : > { %s1867_s8 = scalar_lea.vmem %s2130_s6, 4096  ;;  %s1958_s11 = smov [#allocation2]  }
  0x5a   : > { %p1868_p10 = scmp.ne.s32.totalorder %s2130_s6, %s1867_s8  ;;  %s1872_s14 = sshll.u32 %s1958_s11, 4  ;;  %s1873_s14 = int_to_ptr.vmem [resolvable:$false] %s1872_s14 }
  0x5b   : > { %s1874_s22 = scalar_lea.vmem %s1873_s14, 8192  ;;  %p1875_p9 = scmp.lt.s32.totalorder %s2130_s6, %s1873_s14 }
  0x5c   : > { %p1870_p2 = pnand %p1868_p10, %p1854_p1  ;;  %p1876_p6 = scmp.lt.s32.totalorder %s1874_s22, %s1867_s8 }
  0x5e   : > { %p1871_p0 = pneg %p1870_p2  ;;  %p1877_p12 = por %p1876_p6, %p1875_p9 }
  0x60   : > { %p1878_p13 = pnand %p1877_p12, %p1871_p0 }
  0x62   : > { %1881 = shalt.err (!%p1878_p13)
}
  0x63   : > { %1739 = dma.hbm_to_vmem [thread:$0]  (!%p2552_p7), %s2128_s20, 4096, %s2130_s6, %s2132_s5, %s1956_s23, %s1956_s23, %s1957_s25  }
  0x64   : > { %p2553_p1 = scmp.ne.s32.totalorder %s2547_s29, 0 }
  0x65   : > { %s2166_s1 = sand.u32 (!%p2553_p1), 1, %s1944_s16   ;;  %p2554_p11 = scmp.ne.s32.totalorder (!%p2553_p1), %s2544_s26, 0 }
  0x66   : > { %205 = sbr.rel (%p2553_p1) target bundleno = 654 (0x28e), region = 36  ;;  %s1448_s9 = sshll.u32 (!%p2553_p1), %s2166_s1, 8 }
  0x67   : > { %s208_s30 = scalar_lea.sflag (!%p2553_p1), [#allocation3], %s2166_s1  ;;  %s2172_s7 = scalar_lea.vmem (!%p2553_p1), [#allocation2], %s1448_s9 }
  0x6d   : > { %1927 = dma.done.wait (%p2554_p11), %s208_s30, 4096  }
  0x6e   : > { %1929 = vsyncadd (%p2554_p11), %s208_s30, 4294963200  ;;  %p2555_p7 = scmp.eq.s32.totalorder %s2012_s19, 0 }
  0x70   : > { %1931 = dma.done.wait (%p2555_p7), [#allocation6], 1600   ;;  %p2556_p3 = pmov %p2555_p7 }
  0x71   : > { %v1959_v0 = vmov 0.0|0.0   ;;  %vm1960_vm0 = vmmov 0   ;;  %v1961_v1 = vmov 0.0   ;;  %v2189_v2 = vld [vmem:[%s2172_s7] sm:$0xff]  ;;  %v2192_v3 = vld [vmem:[%s2172_s7 + $0x8] sm:$0xff]  ;;  %v2203_v7 = vld [vmem:[%s2172_s7 + $0x10] sm:$0xff] }
  0x72   : > { %1933 = vsyncadd (%p2556_p3), [#allocation6], 4294965696  ;;  %1651 = vmatprep.subr.bf16.mxu0 %v1959_v0  ;;  %1657 = vmatprep.subr.bf16.mxu1 %v1959_v0  ;;  %v2195_v4 = vld [vmem:[%s2172_s7 + $0x20] sm:$0xff]  ;;  %v1652_v5 = vpack.c.bf16 %v2192_v3, %v2189_v2  ;;  %v2200_v6 = vld [vmem:[%s2172_s7 + $0x28] sm:$0xff]  ;;  %vm279_vm1 = vcmask 261120   ;;  %vm861_vm2 = vcmask 1041409  }
  0x73   : > { %1538 = vmatprep.mubr.msk.f32.mxu0 %vm1960_vm0, %v1961_v1  ;;  %1549 = vmatprep.mubr.msk.f32.mxu1 %vm1960_vm0, %v1961_v1  ;;  %v2206_v8 = vld [vmem:[%s2172_s7 + $0x18] sm:$0xff]  ;;  %v1658_v9 = vpack.c.bf16 %v2200_v6, %v2195_v4  ;;  %v2211_v10 = vld [vmem:[%s2172_s7 + $0x30] sm:$0xff]  ;;  %v2222_v14 = vld [vmem:[%s2172_s7 + $0x40] sm:$0xff]  ;;  %vm864_vm3 = vcmask 1042434   ;;  %vm867_vm4 = vcmask 1043459   ;;  %vm870_vm5 = vcmask 1044484  }
  0x74   : > { %v2214_v11 = vld [vmem:[%s2172_s7 + $0x38] sm:$0xff]  ;;  %1653 = vmatpush3.bf16.msra.mxu0 %v1652_v5  ;;  %v1655_v12 = vpack.c.bf16 %v2206_v8, %v2203_v7  ;;  %v2225_v15 = vld [vmem:[%s2172_s7 + $0x48] sm:$0xff]  ;;  %v2229_v16 = vld [vmem:[%s2172_s7 + $0x60] sm:$0xff]  ;;  %vm873_vm6 = vcmask 1045509   ;;  %vm876_vm7 = vcmask 1046534   ;;  %vm879_vm8 = vcmask 1047559  }
  0x75   : > { %1659 = vmatpush3.bf16.msra.mxu1 %v1658_v9  ;;  %1654 = vmatprep.subr.bf16.mxu0 %v1959_v0  ;;  %v1661_v13 = vpack.c.bf16 %v2214_v11, %v2211_v10  ;;  %v2232_v17 = vld [vmem:[%s2172_s7 + $0x68] sm:$0xff]  ;;  %v2234_v18 = vld [vmem:[#allocation5] sm:$0x7]  ;;  %v1664_v19 = vpack.c.bf16 %v2225_v15, %v2222_v14  ;;  %v2242_v21 = vld [vmem:[%s2172_s7 + $0x50] sm:$0xff]  ;;  %s2389_s23 = scalar_lea.vmem [#allocation8], %s1448_s9  ;;  %s1474_s25 = sshll.u32 %s2012_s19, 12 }
  0x76   : > { %1660 = vmatprep.subr.bf16.mxu1 %v1959_v0  ;;  %v1670_v20 = vpack.c.bf16 %v2232_v17, %v2229_v16  ;;  %v2245_v22 = vld [vmem:[%s2172_s7 + $0x58] sm:$0xff]  ;;  %v2249_v23 = vld [vmem:[%s2172_s7 + $0x70] sm:$0xff]  ;;  %v2264_v27 = vld [vmem:[%s2172_s7 + $0x80] sm:$0xff]  ;;  %s1346_s20 = sshll.u32 %s2389_s23, 4  ;;  %s2461_s5 = scalar_lea.hbm %s2536_s4, %s1474_s25  ;;  %s2463_s20 = int_to_ptr.vmem [resolvable:$true] %s1346_s20 }
  0x77   : > { %v2252_v24 = vld [vmem:[%s2172_s7 + $0x78] sm:$0xff]  ;;  %v1667_v25 = vpack.c.bf16 %v2245_v22, %v2242_v21  ;;  %v2267_v28 = vld [vmem:[%s2172_s7 + $0x88] sm:$0xff]  ;;  %v2273_v29 = vld [vmem:[%s2172_s7 + $0xa0] sm:$0xff]  ;;  %s1332_s10 = scalar_lea.sflag [#allocation4], %s2166_s1  ;;  %s1882_s12 = scalar_lea.vmem %s2463_s20, 4096 }
  0x78   : > { %1656 = vmatpush3.bf16.msra.mxu0 %v1655_v12  ;;  %v1673_v26 = vpack.c.bf16 %v2252_v24, %v2249_v23  ;;  %v2276_v30 = vld [vmem:[%s2172_s7 + $0xa8] sm:$0xff]  ;;  %v1676_v31 = vpack.c.bf16 %v2267_v28, %v2264_v27  ;;  %v2286_v33 = vld [vmem:[%s2172_s7 + $0x90] sm:$0xff]  ;;  %v2289_v34 = vld [vmem:[%s2172_s7 + $0x98] sm:$0xff]  ;;  %p1883_p8 = scmp.ne.s32.totalorder %s2463_s20, %s1882_s12  ;;  %p2557_p4 = scmp.ne.s32.totalorder %s2545_s27, 0 }
  0x79   : > { %1662 = vmatpush3.bf16.msra.mxu1 %v1661_v13  ;;  %1663 = vmatprep.subr.bf16.mxu0 %v1959_v0  ;;  %v1682_v32 = vpack.c.bf16 %v2276_v30, %v2273_v29  ;;  %v2293_v35 = vld [vmem:[%s2172_s7 + $0xb0] sm:$0xff]  ;;  %v2296_v36 = vld [vmem:[%s2172_s7 + $0xb8] sm:$0xff]  ;;  %v1679_v37 = vpack.c.bf16 %v2289_v34, %v2286_v33  ;;  %v2308_v39 = vld [vmem:[%s2172_s7 + $0xc0] sm:$0xff]  ;;  %s1963_s13 = smov [#allocation8]  }
  0x7a   : > { %1669 = vmatprep.subr.bf16.mxu1 %v1959_v0  ;;  %v1685_v38 = vpack.c.bf16 %v2296_v36, %v2293_v35  ;;  %v2311_v40 = vld [vmem:[%s2172_s7 + $0xc8] sm:$0xff]  ;;  %v2317_v41 = vld [vmem:[%s2172_s7 + $0xe0] sm:$0xff]  ;;  %v2330_v45 = vld [vmem:[%s2172_s7 + $0xd0] sm:$0xff]  ;;  %p1884_p5 = pnand %p1883_p8, %p2557_p4  ;;  %s1886_s8 = sshll.u32 %s1963_s13, 4  ;;  %s1887_s8 = int_to_ptr.vmem [resolvable:$false] %s1886_s8 }
  0x7b   : > { %1539 = vmatmul.mubr.msk.f32.vlgmr.msra.gmra.mrb[0].mxu0 %vm279_vm1, %v2234_v18  ;;  %v2320_v42 = vld [vmem:[%s2172_s7 + $0xe8] sm:$0xff]  ;;  %v1688_v43 = vpack.c.bf16 %v2311_v40, %v2308_v39  ;;  %v2333_v46 = vld [vmem:[%s2172_s7 + $0xd8] sm:$0xff]  ;;  %v2337_v47 = vld [vmem:[%s2172_s7 + $0xf0] sm:$0xff]  ;;  %s1888_s11 = scalar_lea.vmem %s1887_s8, 8192  ;;  %p1889_p2 = scmp.lt.s32.totalorder %s2463_s20, %s1887_s8 }
  0x7c   : > { %1550 = vmatmul.mubr.msk.f32.vlgmr.msra.gmra.mrb[0].mxu1 %vm279_vm1, %v2234_v18  ;;  %1665 = vmatpush3.bf16.msra.mxu0 %v1664_v19  ;;  %v1694_v44 = vpack.c.bf16 %v2320_v42, %v2317_v41  ;;  %v2340_v48 = vld [vmem:[%s2172_s7 + $0xf8] sm:$0xff]  ;;  %v1691_v49 = vpack.c.bf16 %v2333_v46, %v2330_v45  ;;  %v848_v51 = vld [vmem:[#allocation7 + $0x20] sm:$0xff]  ;;  %v849_v52 = vld [vmem:[#allocation7 + $0x28] sm:$0xff]  ;;  %p1885_p10 = pneg %p1884_p5  ;;  %p1890_p0 = scmp.lt.s32.totalorder %s1888_s11, %s1882_s12 }
  0x7d   : > { %1671 = vmatpush3.bf16.msra.mxu1 %v1670_v20  ;;  %1666 = vmatprep.subr.bf16.mxu0 %v1959_v0  ;;  %v1697_v50 = vpack.c.bf16 %v2340_v48, %v2337_v47  ;;  %v1700_v53 = vpack.c.bf16 %v849_v52, %v848_v51  ;;  %v843_v54 = vld [vmem:[#allocation7] sm:$0xff]  ;;  %v844_v55 = vld [vmem:[#allocation7 + $0x8] sm:$0xff]  ;;  %v850_v57 = vld [vmem:[#allocation7 + $0x30] sm:$0xff] }
  0x7e   : > { %1672 = vmatprep.subr.bf16.mxu1 %v1959_v0  ;;  %1560 = vmatprep.mubr.msk.f32.mxu0 %vm1960_vm0, %v1961_v1  ;;  %v1706_v56 = vpack.c.bf16 %v844_v55, %v843_v54  ;;  %v851_v58 = vld [vmem:[#allocation7 + $0x38] sm:$0xff]  ;;  %v845_v60 = vld [vmem:[#allocation7 + $0x10] sm:$0xff]  ;;  %p1891_p9 = por %p1890_p0, %p1889_p2 }
  0x7f   : > { %1571 = vmatprep.mubr.msk.f32.mxu1 %vm1960_vm0, %v1961_v1  ;;  %v1703_v59 = vpack.c.bf16 %v851_v58, %v850_v57  ;;  %v846_v61 = vld [vmem:[#allocation7 + $0x18] sm:$0xff] }
  0x80   : > { %1668 = vmatpush3.bf16.msra.mxu0 %v1667_v25  ;;  %v1709_v62 = vpack.c.bf16 %v846_v61, %v845_v60  ;;  %p1892_p6 = pnand %p1891_p9, %p1885_p10 }
  0x81   : > { %1674 = vmatpush3.bf16.msra.mxu1 %v1673_v26  ;;  %1675 = vmatprep.subr.bf16.mxu0 %v1959_v0 }
  0x82   : > { %1681 = vmatprep.subr.bf16.mxu1 %v1959_v0 }
  0x83   : > { %1561 = vmatmul.mubr.msk.f32.vlgmr.msra.gmra.mrb[2].mxu0 %vm279_vm1, %v2234_v18 }
  0x84   : > { %1572 = vmatmul.mubr.msk.f32.vlgmr.msra.gmra.mrb[2].mxu1 %vm279_vm1, %v2234_v18  ;;  %1677 = vmatpush3.bf16.msra.mxu0 %v1676_v31 }
  0x85   : > { %1683 = vmatpush3.bf16.msra.mxu1 %v1682_v32  ;;  %1678 = vmatprep.subr.bf16.mxu0 %v1959_v0 }
  0x86   : > { %1684 = vmatprep.subr.bf16.mxu1 %v1959_v0  ;;  %1582 = vmatprep.mubr.msk.f32.mxu0 %vm1960_vm0, %v1961_v1 }
  0x87   : > { %1593 = vmatprep.mubr.msk.f32.mxu1 %vm1960_vm0, %v1961_v1 }
  0x88   : > { %1680 = vmatpush3.bf16.msra.mxu0 %v1679_v37 }
  0x89   : > { %1686 = vmatpush3.bf16.msra.mxu1 %v1685_v38  ;;  %1687 = vmatprep.subr.bf16.mxu0 %v1959_v0 }
  0x8a   : > { %1693 = vmatprep.subr.bf16.mxu1 %v1959_v0 }
  0x8b   : > { %1583 = vmatmul.mubr.msk.f32.vlgmr.msra.gmra.mrb[4].mxu0 %vm279_vm1, %v2234_v18 }
  0x8c   : > { %1594 = vmatmul.mubr.msk.f32.vlgmr.msra.gmra.mrb[4].mxu1 %vm279_vm1, %v2234_v18  ;;  %1689 = vmatpush3.bf16.msra.mxu0 %v1688_v43 }
  0x8d   : > { %1695 = vmatpush3.bf16.msra.mxu1 %v1694_v44  ;;  %1690 = vmatprep.subr.bf16.mxu0 %v1959_v0 }
  0x8e   : > { %1696 = vmatprep.subr.bf16.mxu1 %v1959_v0  ;;  %1604 = vmatprep.mubr.msk.f32.mxu0 %vm1960_vm0, %v1961_v1 }
  0x8f   : > { %1615 = vmatprep.mubr.msk.f32.mxu1 %vm1960_vm0, %v1961_v1 }
  0x90   : > { %1692 = vmatpush3.bf16.msra.mxu0 %v1691_v49 }
  0x91   : > { %1698 = vmatpush3.bf16.msra.mxu1 %v1697_v50  ;;  %1699 = vmatprep.subr.bf16.mxu0 %v1959_v0 }
  0x92   : > { %1705 = vmatprep.subr.bf16.mxu1 %v1959_v0 }
  0x93   : > { %1605 = vmatmul.mubr.msk.f32.vlgmr.msra.gmra.mrb[6].mxu0 %vm279_vm1, %v2234_v18 }
  0x94   : > { %1616 = vmatmul.mubr.msk.f32.vlgmr.msra.gmra.mrb[6].mxu1 %vm279_vm1, %v2234_v18  ;;  %1626 = vmatprep.mubr.msk.f32.mxu0 %vm1960_vm0, %v1961_v1 }
  0x95   : > { %1637 = vmatprep.mubr.msk.f32.mxu1 %vm1960_vm0, %v1961_v1  ;;  %1701 = vmatpush3.bf16.msra.mxu0 %v1700_v53 }
  0x96   : > { %1707 = vmatpush3.bf16.msra.mxu1 %v1706_v56  ;;  %1702 = vmatprep.subr.bf16.mxu0 %v1959_v0 }
  0x97   : > { %1708 = vmatprep.subr.bf16.mxu1 %v1959_v0 }
  0x99   : > { %1704 = vmatpush3.bf16.msra.mxu0 %v1703_v59 }
  0x9a   : > { %1710 = vmatpush3.bf16.msra.mxu1 %v1709_v62  ;;  %1711 = vmatprep.subr.bf16.mxu0 %v1959_v0 }
 0x14e   : > { %v349_v63 = vpop.f32.mrb[0].mxu0 }
 0x14f   : > { %v860_v5 = vrot.slane %v349_v63, 1  ;;  %v1044_v9 = vrot.slane %v349_v63, 2  ;;  %v419_v12 = vpop.f32.mrb[0].mxu1  ;;  %v1540_v13 = vpop.f32.mrb[1].mxu0 }
 0x150   : > { %v953_v18 = vrot.slane %v419_v12, 7  ;;  %v1045_v19 = vrot.slane %v419_v12, 1  ;;  %v1551_v20 = vpop.f32.mrb[1].mxu1 }
 0x151   : > { %v862_v25 = vsel %vm861_vm2, %v419_v12, %v860_v5 }
 0x152   : > { %v954_v26 = vsel %vm861_vm2, %v953_v18, %v349_v63  ;;  %v1046_v31 = vsel %vm861_vm2, %v1045_v19, %v1044_v9 }
 0x156   : > { %v489_v32 = vpop.f32.mrb[2].mxu0 }
 0x157   : > { %v863_v37 = vrot.slane %v489_v32, 7  ;;  %v955_v38 = vrot.slane %v489_v32, 6  ;;  %v1047_v43 = vsel %vm864_vm3, %v489_v32, %v1046_v31  ;;  %v559_v44 = vpop.f32.mrb[2].mxu1  ;;  %v1562_v49 = vpop.f32.mrb[3].mxu0 }
 0x158   : > { %v866_v50 = vrot.slane %v559_v44, 6  ;;  %v957_v51 = vrot.slane %v559_v44, 5  ;;  %v1048_v52 = vrot.slane %v559_v44, 7  ;;  %v1573_v53 = vpop.f32.mrb[3].mxu1 }
 0x159   : > { %v865_v54 = vsel %vm864_vm3, %v863_v37, %v862_v25  ;;  %v956_v55 = vsel %vm864_vm3, %v955_v38, %v954_v26  ;;  %v1040_v37 = vld [vmem:[#allocation7 + $0x40] sm:$0xff]  ;;  %v1041_v38 = vld [vmem:[#allocation7 + $0x48] sm:$0xff] }
 0x15a   : > { %v868_v56 = vsel %vm867_vm4, %v866_v50, %v865_v54  ;;  %v958_v57 = vsel %vm867_vm4, %v957_v51, %v956_v55  ;;  %v1049_v58 = vsel %vm867_vm4, %v1048_v52, %v1047_v43 }
 0x15e   : > { %v629_v59 = vpop.f32.mrb[4].mxu0 }
 0x15f   : > { %v869_v60 = vrot.slane %v629_v59, 5  ;;  %v959_v61 = vrot.slane %v629_v59, 4  ;;  %v1050_v62 = vrot.slane %v629_v59, 6  ;;  %v1584_v63 = vpop.f32.mrb[5].mxu0  ;;  %v699_v5 = vpop.f32.mrb[4].mxu1 }
 0x160   : > { %v872_v9 = vrot.slane %v699_v5, 4  ;;  %v961_v12 = vrot.slane %v699_v5, 3  ;;  %v1052_v13 = vrot.slane %v699_v5, 5  ;;  %v1595_v18 = vpop.f32.mrb[5].mxu1 }
 0x161   : > { %v871_v19 = vsel %vm870_vm5, %v869_v60, %v868_v56  ;;  %v960_v20 = vsel %vm870_vm5, %v959_v61, %v958_v57  ;;  %v1051_v31 = vsel %vm870_vm5, %v1050_v62, %v1049_v58  ;;  %v1712_v56 = vpack.c.bf16 %v1041_v38, %v1040_v37  ;;  %v1042_v60 = vld [vmem:[#allocation7 + $0x50] sm:$0xff]  ;;  %v1043_v61 = vld [vmem:[#allocation7 + $0x58] sm:$0xff] }
 0x162   : > { %v874_v25 = vsel %vm873_vm6, %v872_v9, %v871_v19  ;;  %v962_v26 = vsel %vm873_vm6, %v961_v12, %v960_v20  ;;  %v1053_v32 = vsel %vm873_vm6, %v1052_v13, %v1051_v31  ;;  %v1715_v12 = vpack.c.bf16 %v1043_v61, %v1042_v60 }
 0x166   : > { %v769_v43 = vpop.f32.mrb[6].mxu0 }
 0x167   : > { %v875_v44 = vrot.slane %v769_v43, 3  ;;  %v963_v49 = vrot.slane %v769_v43, 2  ;;  %v1054_v50 = vrot.slane %v769_v43, 4  ;;  %v839_v51 = vpop.f32.mrb[6].mxu1  ;;  %v1606_v52 = vpop.f32.mrb[7].mxu0 }
 0x168   : > { %v878_v53 = vrot.slane %v839_v51, 2  ;;  %v965_v54 = vrot.slane %v839_v51, 1  ;;  %v1056_v55 = vrot.slane %v839_v51, 3  ;;  %v1617_v59 = vpop.f32.mrb[7].mxu1 }
 0x169   : > { %v877_v57 = vsel %vm876_vm7, %v875_v44, %v874_v25  ;;  %v964_v58 = vsel %vm876_vm7, %v963_v49, %v962_v26  ;;  %v1055_v62 = vsel %vm876_vm7, %v1054_v50, %v1053_v32  ;;  %v1463_v26 = vld [vmem:[%s2535_s3] ss:$0 sm:$0xff]  ;;  %v1962_v44 = vmov 1966171168  }
 0x16a   : > { %v880_v63 = vsel %vm879_vm8, %v878_v53, %v877_v57  ;;  %v966_v5 = vsel %vm879_vm8, %v965_v54, %v964_v58  ;;  %v1057_v9 = vsel %vm879_vm8, %v1056_v55, %v1055_v62  ;;  %v1180_v49 = vunpack.c.l.s4 %v1962_v44 }
 0x16b   : > { %1627 = vmatmul.mubr.msk.f32.vlgmr.msra.gmra.mrb[8].mxu0 %vm279_vm1, %v880_v63  ;;  %1638 = vmatmul.mubr.msk.f32.vlgmr.msra.gmra.mrb[8].mxu1 %vm279_vm1, %v966_v5  ;;  %v1182_v50 = vlaneseq }
 0x16c   : > { %1713 = vmatpush3.bf16.msra.mxu0 %v1712_v56  ;;  %1648 = vmatprep.mubr.msk.f32.mxu0 %vm1960_vm0, %v1961_v1  ;;  %v1181_v51 = vunpack.c.0.s8 %v1180_v49 }
 0x16d   : > { %1714 = vmatprep.subr.bf16.mxu0 %v1959_v0  ;;  %v1183_v52 = vshrl.u32 %v1182_v50, 7 }
 0x16f   : > { %v1184_v53 = vsub.s32 %v1181_v51, %v1183_v52  ;;  %v1229_v56 = vsub.s32 0, %v1183_v52 }
 0x170   : > { %1716 = vmatpush3.bf16.msra.mxu0 %v1715_v12 }
 0x173   : > { %1649 = vmatmul.mubr.msk.f32.vlgmr.msra.gmra.mrb[10].mxu0 %vm279_vm1, %v1057_v9 }
 0x23e   : > { %v949_v13 = vpop.f32.mrb[8].mxu0  ;;  %v1035_v18 = vpop.f32.mrb[8].mxu1 }
 0x23f   : > { %v1036_v19 = vadd.f32 %v1035_v18, %v949_v13  ;;  %v1628_v20 = vpop.f32.mrb[9].mxu0  ;;  %v1639_v31 = vpop.f32.mrb[9].mxu1 }
 0x246   : > { %v1126_v25 = vpop.f32.mrb[10].mxu0 }
 0x247   : > { %v1130_v32 = vadd.f32 %v1126_v25, %v1036_v19  ;;  %v1650_v37 = vpop.f32.mrb[11].mxu0 }
 0x249   : > { %v1138_v38 = vadd.f32 %v1463_v26, %v1130_v32 }
 0x24b   : > { %v1464_v43 = vmul.f32 -1.442695, %v1138_v38 }
 0x24d   : > { %1792 = vpow2.f32 %v1464_v43 }
 0x257   : > { %v1793_v1 = vpop.eup %1792 }
 0x258   : > { %v1142_v0 = vadd.f32 1.0, %v1793_v1 }
 0x25a   : > { %1794 = vrcp.f32 %v1142_v0 }
 0x264   : > { %v1795_v54 = vpop.eup %1794 }
 0x265   : > { %v1178_v55 = vcombine.high %v1795_v54, %v1795_v54  ;;  %v1185_v59 = vrot.slane %v1795_v54, %v1184_v53 }
 0x267   : > { %v1192_v57 = vrot.slane %v1178_v55, %v1184_v53  ;;  %v1193_v58 = vcombine.high %v1185_v59, %v1185_v59  ;;  %v1201_v60 = vrot.slane %v1185_v59, %v1184_v53 }
 0x269   : > { %v1194_v61 = vcombine.high %v1192_v57, %v1192_v57  ;;  %v1208_v62 = vrot.slane %v1192_v57, %v1184_v53  ;;  %v1215_v63 = vrot.slane %v1193_v58, %v1184_v53  ;;  %v1223_v5 = vcombine.high %v1201_v60, %v1201_v60 }
 0x26a   : > { %v1230_v9 = vrot.slane %v1201_v60, %v1229_v56 }
 0x26b   : > { %v1222_v12 = vrot.slane %v1194_v61, %v1184_v53  ;;  %v1224_v13 = vcombine.high %v1208_v62, %v1208_v62  ;;  %v1225_v18 = vcombine.high %v1215_v63, %v1215_v63  ;;  %v1234_v19 = vrot.slane %v1215_v63, %v1229_v56 }
 0x26c   : > { %v1238_v20 = vrot.slane %v1223_v5, %v1229_v56  ;;  %v1246_v31 = vrot.slane %v1208_v62, %v1229_v56  ;;  %v1267_v25 = vmul.f32 %v1230_v9, %v2189_v2  ;;  %v1268_v26 = vmul.f32 %v1230_v9, %v2192_v3 }
 0x26d   : > { %v1226_v32 = vcombine.high %v1222_v12, %v1222_v12  ;;  %v1242_v37 = vrot.slane %v1225_v18, %v1229_v56  ;;  %v1250_v38 = vrot.slane %v1222_v12, %v1229_v56  ;;  %v1254_v43 = vrot.slane %v1224_v13, %v1229_v56 }
 0x26e   : > { %v1269_v1 = vmul.f32 %v1230_v9, %v2203_v7  ;;  %v1270_v0 = vmul.f32 %v1230_v9, %v2206_v8  ;;  %v1271_v44 = vmul.f32 %v1234_v19, %v2195_v4  ;;  %v1272_v49 = vmul.f32 %v1234_v19, %v2200_v6  ;;  %1299 = vst.msk [vmem:[%s2389_s23] sm:$0xff] %vm279_vm1, %v1267_v25 }
 0x26f   : > { %1300 = vst.msk [vmem:[%s2389_s23 + $0x8] sm:$0xff] %vm279_vm1, %v1268_v26  ;;  %v1258_v2 = vrot.slane %v1226_v32, %v1229_v56  ;;  %v1273_v3 = vmul.f32 %v1234_v19, %v2211_v10  ;;  %v1274_v4 = vmul.f32 %v1234_v19, %v2214_v11  ;;  %v1275_v6 = vmul.f32 %v1238_v20, %v2222_v14 }
 0x270   : > { %v1276_v7 = vmul.f32 %v1238_v20, %v2225_v15  ;;  %v1277_v8 = vmul.f32 %v1238_v20, %v2242_v21  ;;  %v1278_v50 = vmul.f32 %v1238_v20, %v2245_v22  ;;  %v1279_v51 = vmul.f32 %v1242_v37, %v2229_v16  ;;  %1301 = vst.msk [vmem:[%s2389_s23 + $0x10] sm:$0xff] %vm279_vm1, %v1269_v1 }
 0x271   : > { %1302 = vst.msk [vmem:[%s2389_s23 + $0x18] sm:$0xff] %vm279_vm1, %v1270_v0  ;;  %1303 = vst.msk [vmem:[%s2389_s23 + $0x20] sm:$0xff] %vm279_vm1, %v1271_v44  ;;  %v1280_v10 = vmul.f32 %v1242_v37, %v2232_v17  ;;  %v1281_v11 = vmul.f32 %v1242_v37, %v2249_v23  ;;  %v1282_v14 = vmul.f32 %v1242_v37, %v2252_v24 }
 0x272   : > { %1304 = vst.msk [vmem:[%s2389_s23 + $0x28] sm:$0xff] %vm279_vm1, %v1272_v49  ;;  %v1283_v15 = vmul.f32 %v1246_v31, %v2264_v27  ;;  %1305 = vst.msk [vmem:[%s2389_s23 + $0x30] sm:$0xff] %vm279_vm1, %v1273_v3  ;;  %v1284_v16 = vmul.f32 %v1246_v31, %v2267_v28  ;;  %v1285_v17 = vmul.f32 %v1246_v31, %v2286_v33 }
 0x273   : > { %1306 = vst.msk [vmem:[%s2389_s23 + $0x38] sm:$0xff] %vm279_vm1, %v1274_v4  ;;  %1307 = vst.msk [vmem:[%s2389_s23 + $0x40] sm:$0xff] %vm279_vm1, %v1275_v6  ;;  %v1286_v21 = vmul.f32 %v1246_v31, %v2289_v34  ;;  %v1287_v22 = vmul.f32 %v1250_v38, %v2273_v29  ;;  %v1288_v23 = vmul.f32 %v1250_v38, %v2276_v30 }
 0x274   : > { %1308 = vst.msk [vmem:[%s2389_s23 + $0x48] sm:$0xff] %vm279_vm1, %v1276_v7  ;;  %1309 = vst.msk [vmem:[%s2389_s23 + $0x50] sm:$0xff] %vm279_vm1, %v1277_v8  ;;  %v1289_v24 = vmul.f32 %v1250_v38, %v2293_v35  ;;  %v1290_v27 = vmul.f32 %v1250_v38, %v2296_v36  ;;  %v1291_v28 = vmul.f32 %v1254_v43, %v2308_v39 }
 0x275   : > { %1310 = vst.msk [vmem:[%s2389_s23 + $0x58] sm:$0xff] %vm279_vm1, %v1278_v50  ;;  %1311 = vst.msk [vmem:[%s2389_s23 + $0x60] sm:$0xff] %vm279_vm1, %v1279_v51  ;;  %v1292_v29 = vmul.f32 %v1254_v43, %v2311_v40  ;;  %v1293_v30 = vmul.f32 %v1254_v43, %v2330_v45  ;;  %v1294_v33 = vmul.f32 %v1254_v43, %v2333_v46 }
 0x276   : > { %1312 = vst.msk [vmem:[%s2389_s23 + $0x68] sm:$0xff] %vm279_vm1, %v1280_v10  ;;  %1313 = vst.msk [vmem:[%s2389_s23 + $0x70] sm:$0xff] %vm279_vm1, %v1281_v11  ;;  %v1295_v34 = vmul.f32 %v1258_v2, %v2317_v41  ;;  %v1296_v35 = vmul.f32 %v1258_v2, %v2320_v42  ;;  %v1297_v36 = vmul.f32 %v1258_v2, %v2337_v47 }
 0x277   : > { %1314 = vst.msk [vmem:[%s2389_s23 + $0x78] sm:$0xff] %vm279_vm1, %v1282_v14  ;;  %1315 = vst.msk [vmem:[%s2389_s23 + $0x80] sm:$0xff] %vm279_vm1, %v1283_v15  ;;  %v1298_v39 = vmul.f32 %v1258_v2, %v2340_v48 }
 0x278   : > { %1316 = vst.msk [vmem:[%s2389_s23 + $0x88] sm:$0xff] %vm279_vm1, %v1284_v16  ;;  %1317 = vst.msk [vmem:[%s2389_s23 + $0x90] sm:$0xff] %vm279_vm1, %v1285_v17 }
 0x279   : > { %1318 = vst.msk [vmem:[%s2389_s23 + $0x98] sm:$0xff] %vm279_vm1, %v1286_v21  ;;  %1319 = vst.msk [vmem:[%s2389_s23 + $0xa0] sm:$0xff] %vm279_vm1, %v1287_v22 }
 0x27a   : > { %1320 = vst.msk [vmem:[%s2389_s23 + $0xa8] sm:$0xff] %vm279_vm1, %v1288_v23  ;;  %1321 = vst.msk [vmem:[%s2389_s23 + $0xb0] sm:$0xff] %vm279_vm1, %v1289_v24 }
 0x27b   : > { %1322 = vst.msk [vmem:[%s2389_s23 + $0xb8] sm:$0xff] %vm279_vm1, %v1290_v27  ;;  %1323 = vst.msk [vmem:[%s2389_s23 + $0xc0] sm:$0xff] %vm279_vm1, %v1291_v28 }
 0x27c   : > { %1324 = vst.msk [vmem:[%s2389_s23 + $0xc8] sm:$0xff] %vm279_vm1, %v1292_v29  ;;  %1325 = vst.msk [vmem:[%s2389_s23 + $0xd0] sm:$0xff] %vm279_vm1, %v1293_v30 }
 0x27d   : > { %1326 = vst.msk [vmem:[%s2389_s23 + $0xd8] sm:$0xff] %vm279_vm1, %v1294_v33  ;;  %1327 = vst.msk [vmem:[%s2389_s23 + $0xe0] sm:$0xff] %vm279_vm1, %v1295_v34 }
 0x27e   : > { %1328 = vst.msk [vmem:[%s2389_s23 + $0xe8] sm:$0xff] %vm279_vm1, %v1296_v35  ;;  %1329 = vst.msk [vmem:[%s2389_s23 + $0xf0] sm:$0xff] %vm279_vm1, %v1297_v36 }
 0x27f   : > { %1330 = vst.msk [vmem:[%s2389_s23 + $0xf8] sm:$0xff] %vm279_vm1, %v1298_v39 }
 0x280   : > { %1895 = shalt.err (!%p1892_p6)
}
 0x281   : > { %s1896_s14 = scalar_lea.hbm %s2461_s5, 4096  ;;  %s1900_s30 = scalar_lea.hbm %s2536_s4, 8192 }
 0x282   : > { %p1897_p12 = scmp.ne.s32.totalorder %s2461_s5, %s1896_s14  ;;  %p1901_p11 = scmp.lt.u32.totalorder %s2461_s5, %s2536_s4 }
 0x283   : > { %p1902_p7 = scmp.lt.u32.totalorder %s1900_s30, %s1896_s14  ;;  %p1904_p8 = scmp.lt.u32.totalorder %s1896_s14, %s2461_s5 }
 0x284   : > { %p1898_p13 = pnand %p1897_p12, %p2557_p4 }
 0x285   : > { %p1903_p3 = por %p1902_p7, %p1901_p11 }
 0x286   : > { %p1899_p1 = pneg %p1898_p13 }
 0x287   : > { %p1905_p5 = por %p1904_p8, %p1903_p3 }
 0x289   : > { %p1906_p10 = pnand %p1905_p5, %p1899_p1 }
 0x28b   : > { %1909 = shalt.err (!%p1906_p10)
}
 0x28c   : > { %s1964_s29 = smov 128   ;;  %s1965_s23 = smov 8  }
 0x28d   : > { %1727 = dma.vmem_to_hbm [thread:$0]  (%p2557_p4), %s2463_s20, 4096, %s2461_s5, %s1332_s10, %s1964_s29, %s1964_s29, %s1965_s23  }
 0x28e PF: > { %s1361_s25 = sand.u32 1, %s1940_s15   ;;  %p2558_p2 = scmp.ne.s32.totalorder %s2546_s28, 0 }
 0x28f   : > { %p2559_p0 = scmp.ge.s32.totalorder %s1952_s18, 2  ;;  %s1362_s19 = scalar_lea.sflag [#allocation4], %s1361_s25 }
 0x291   : > { %p1741_p9 = pnand %p2559_p0, %p2558_p2 }
 0x293   : > { %1935 = dma.done.wait (!%p1741_p9), %s1362_s19, 4096  }
 0x294   : > { %1937 = vsyncadd (!%p1741_p9), %s1362_s19, 4294963200  ;;  %p18_p6 = scmp.ge.s32.totalorder %s2016_s21, 4   ;;  %s2560_s15 = smov %s1944_s16 }
 0x295   : > { %s2561_s16 = smov %s1948_s17  ;;  %s2562_s17 = smov %s2028_s24 }
 0x296   : > { %s2563_s18 = smov %s2016_s21  ;;  %20 = sbr.rel (!%p18_p6) target bundleno = 8 (0x8), region = 91 }
 0x29d   :  { %1367 = vsyncpa [#allocation3], 1 }
 0x29e   :  { %1369 = vsyncpa [#allocation3 + $0x1], 1 }
 0x29f   :  { %1370 = vsyncpa [#allocation6], 1 }
 0x2a0   :  { %1371 = vsyncpa [#allocation4], 1 }
 0x2a1   :  { %1373 = vsyncpa [#allocation4 + $0x1], 1 }

</bundles_post_ra>
